<compile_context>
chip_gen: v5e
topology: v5e:2x2
jax: 0.10.0
libtpu: 0.0.40
codegen_flags: <defaults>
</compile_context>

<pallas_src>
import functools

import jax
import jax.numpy as jnp
from jax.experimental import pallas as pl
from jax.experimental.pallas import tpu as pltpu


def _make_pool_kernel(fs: int, pw: int, ph: int, w: int, h: int):
    """Kernel over a (TB, w, h) block -> (TB, fs, fs) max pool.

    Padding is virtual: windows that extend past w/h are clamped with 0
    (matching torch.nn.functional.pad(..., 0) + MaxPool2d).
    """
    zero = 0

    def kernel(x_ref, o_ref):
        x = x_ref[...]                      # (TB, w, h)
        tb = x.shape[0]

        # ---- Pass 1: reduce along W (sublane dim) first -> (TB, fs, h). ----
        rows = []
        for i in range(fs):
            lo = i * pw
            hi = min(lo + pw, w)
            if hi <= lo:
                # Output row lies entirely inside the zero padding.
                rows.append(jnp.zeros((tb, 1, h), x.dtype))
            else:
                m = jnp.max(x[:, lo:hi, :], axis=1, keepdims=True)  # (TB,1,h)
                if hi - lo < pw:
                    # Partially padded window: zeros participate in the max.
                    m = jnp.maximum(m, jnp.array(zero, x.dtype))
                rows.append(m)
        t = jnp.concatenate(rows, axis=1)   # (TB, fs, h)

        # ---- Pass 2: reduce along H (lane dim) on the shrunken slab. ----
        cols = []
        for j in range(fs):
            lo = j * ph
            hi = min(lo + ph, h)
            if hi <= lo:
                cols.append(jnp.zeros((tb, fs, 1), x.dtype))
            else:
                m = jnp.max(t[:, :, lo:hi], axis=2, keepdims=True)  # (TB,fs,1)
                if hi - lo < ph:
                    m = jnp.maximum(m, jnp.array(zero, x.dtype))
                cols.append(m)

        # One dense store per grid step.
        o_ref[...] = jnp.concatenate(cols, axis=2)  # (TB, fs, fs)

    return kernel


@functools.partial(jax.jit, static_argnames=("fixed_size",))
def fixed_pooling(x: jax.Array, fixed_size: int) -> jax.Array:
    """Pallas implementation of FixedPooling.forward. x: (b, w, h)."""
    b, w, h = x.shape
    fs = fixed_size
    pw = -(-w // fs)                 # pool window along W
    ph = -(-h // fs)                 # pool window along H

    itemsize = jnp.dtype(x.dtype).itemsize
    plane_bytes = w * h * itemsize

    # --- Batch-tile (TB) sizing: amortize the ~0.35us/step overhead with big
    # blocks, but stay within a VMEM budget that is safe on v5e/v6e (128 MiB)
    # and v7x (64 MiB) once double-buffered.
    per_buffer_budget = 12 * 1024 * 1024          # bytes per input buffer copy
    tb = max(1, per_buffer_budget // max(plane_bytes, 1))
    if b >= 2:
        # Keep at least 2 grid steps so both v7x TensorCores get a share.
        tb = min(tb, -(-b // 2))
    tb = min(tb, b)
    grid = -(-b // tb)

    in_block_bytes = 2 * tb * plane_bytes          # double-buffered input
    out_block_bytes = 2 * tb * fs * fs * itemsize  # double-buffered output
    vmem_limit = int(
        min(max(in_block_bytes + out_block_bytes + (2 << 20), 32 << 20),
            56 << 20))

    kernel = _make_pool_kernel(fs, pw, ph, w, h)

    return pl.pallas_call(
        kernel,
        out_shape=jax.ShapeDtypeStruct((b, fs, fs), x.dtype),
        grid_spec=pltpu.PrefetchScalarGridSpec(
            num_scalar_prefetch=0,
            grid=(grid,),
            # Full extent on the last two dims -> legal even though (w, h)
            # is not a multiple of (8, 128).
            in_specs=[pl.BlockSpec((tb, w, h), lambda i: (i, 0, 0))],
            out_specs=pl.BlockSpec((tb, fs, fs), lambda i: (i, 0, 0)),
        ),
        compiler_params=pltpu.CompilerParams(
            dimension_semantics=("parallel",),
            vmem_limit_bytes=vmem_limit,
        ),
    )(x)


def _reference(x: jax.Array, fixed_size: int) -> jax.Array:
    """Pure-JAX reference mirroring the PyTorch forward exactly."""
    b, w, h = x.shape
    fs = fixed_size
    pw = -(-w // fs)
    ph = -(-h // fs)
    x_pad = jnp.pad(x, ((0, 0), (0, fs * pw - w), (0, fs * ph - h)),
                    constant_values=0)
    return x_pad.reshape(b, fs, pw, fs, ph).max(axis=(2, 4))


if __name__ == "__main__":
    key = jax.random.PRNGKey(0)

    # (b, w, h, fixed_size) — first matches the original small test; second
    # exercises fully-padded windows (w < fs), a ragged batch block (b=3 with
    # TB=2) and a wider lane dim.
    configs = [(2, 13, 10, 4), (3, 5, 260, 8)]

    for (b, w, h, fs) in configs:
        key, sub = jax.random.split(key)
        x = jax.random.normal(sub, (b, w, h), dtype=jnp.float32)

        out = jax.block_until_ready(fixed_pooling(x, fs))
        ref = _reference(x, fs)

        assert out.shape == (b, fs, fs), out.shape
        assert jnp.allclose(out, ref), f"Pallas mismatch vs reference for {(b, w, h, fs)}"

    print("KERNEL_OK")
</pallas_src>

<mosaic_0001>
module attributes {stable_mosaic.version = 11 : i64} {
  func.func @kernel(%arg0: i32, %arg1: memref<1x13x10xf32, #tpu.memory_space<vmem>>, %arg2: memref<1x4x4xf32, #tpu.memory_space<vmem>>) attributes {dimension_semantics = [#tpu.dimension_semantics<parallel>], iteration_bounds = array<i64: 2>, scalar_prefetch = 0 : i64, scratch_operands = 0 : i64, tpu.core_type = #tpu.core_type<tc>, window_params = [{transform_indices = @transform_0, window_bounds = array<i64: 1, 13, 10>}, {transform_indices = @transform_1, window_bounds = array<i64: 1, 4, 4>}]} {
    %c0 = arith.constant 0 : index
    %c0_0 = arith.constant 0 : index
    %c0_1 = arith.constant 0 : index
    %0 = vector.load %arg1[%c0, %c0_0, %c0_1] : memref<1x13x10xf32, #tpu.memory_space<vmem>>, vector<1x13x10xf32>
    %1 = vector.extract_strided_slice %0 {offsets = [0, 0, 0], sizes = [1, 4, 10], strides = [1, 1, 1]} : vector<1x13x10xf32> to vector<1x4x10xf32>
    %cst = arith.constant dense<0xFF800000> : vector<1x10xf32>
    %2 = vector.multi_reduction <maximumf>, %1, %cst [1] : vector<1x4x10xf32> to vector<1x10xf32>
    %3 = vector.shape_cast %2 : vector<1x10xf32> to vector<1x1x10xf32>
    %4 = vector.extract_strided_slice %0 {offsets = [0, 4, 0], sizes = [1, 4, 10], strides = [1, 1, 1]} : vector<1x13x10xf32> to vector<1x4x10xf32>
    %cst_2 = arith.constant dense<0xFF800000> : vector<1x10xf32>
    %5 = vector.multi_reduction <maximumf>, %4, %cst_2 [1] : vector<1x4x10xf32> to vector<1x10xf32>
    %6 = vector.shape_cast %5 : vector<1x10xf32> to vector<1x1x10xf32>
    %7 = vector.extract_strided_slice %0 {offsets = [0, 8, 0], sizes = [1, 4, 10], strides = [1, 1, 1]} : vector<1x13x10xf32> to vector<1x4x10xf32>
    %cst_3 = arith.constant dense<0xFF800000> : vector<1x10xf32>
    %8 = vector.multi_reduction <maximumf>, %7, %cst_3 [1] : vector<1x4x10xf32> to vector<1x10xf32>
    %9 = vector.shape_cast %8 : vector<1x10xf32> to vector<1x1x10xf32>
    %10 = vector.extract_strided_slice %0 {offsets = [0, 12, 0], sizes = [1, 1, 10], strides = [1, 1, 1]} : vector<1x13x10xf32> to vector<1x1x10xf32>
    %cst_4 = arith.constant dense<0xFF800000> : vector<1x10xf32>
    %11 = vector.multi_reduction <maximumf>, %10, %cst_4 [1] : vector<1x1x10xf32> to vector<1x10xf32>
    %12 = vector.shape_cast %11 : vector<1x10xf32> to vector<1x1x10xf32>
    %cst_5 = arith.constant 0.000000e+00 : f32
    %13 = vector.broadcast %cst_5 : f32 to vector<1x1x10xf32>
    %14 = arith.maximumf %12, %13 : vector<1x1x10xf32>
    %15 = tpu.concatenate %3, %6, %9, %14 in 1 : vector<1x1x10xf32>, vector<1x1x10xf32>, vector<1x1x10xf32>, vector<1x1x10xf32> -> vector<1x4x10xf32>
    %16 = vector.extract_strided_slice %15 {offsets = [0, 0, 0], sizes = [1, 4, 3], strides = [1, 1, 1]} : vector<1x4x10xf32> to vector<1x4x3xf32>
    %cst_6 = arith.constant dense<0xFF800000> : vector<1x4xf32>
    %17 = vector.multi_reduction <maximumf>, %16, %cst_6 [2] : vector<1x4x3xf32> to vector<1x4xf32>
    %18 = vector.shape_cast %17 : vector<1x4xf32> to vector<1x4x1xf32>
    %19 = vector.extract_strided_slice %15 {offsets = [0, 0, 3], sizes = [1, 4, 3], strides = [1, 1, 1]} : vector<1x4x10xf32> to vector<1x4x3xf32>
    %cst_7 = arith.constant dense<0xFF800000> : vector<1x4xf32>
    %20 = vector.multi_reduction <maximumf>, %19, %cst_7 [2] : vector<1x4x3xf32> to vector<1x4xf32>
    %21 = vector.shape_cast %20 : vector<1x4xf32> to vector<1x4x1xf32>
    %22 = vector.extract_strided_slice %15 {offsets = [0, 0, 6], sizes = [1, 4, 3], strides = [1, 1, 1]} : vector<1x4x10xf32> to vector<1x4x3xf32>
    %cst_8 = arith.constant dense<0xFF800000> : vector<1x4xf32>
    %23 = vector.multi_reduction <maximumf>, %22, %cst_8 [2] : vector<1x4x3xf32> to vector<1x4xf32>
    %24 = vector.shape_cast %23 : vector<1x4xf32> to vector<1x4x1xf32>
    %25 = vector.extract_strided_slice %15 {offsets = [0, 0, 9], sizes = [1, 4, 1], strides = [1, 1, 1]} : vector<1x4x10xf32> to vector<1x4x1xf32>
    %cst_9 = arith.constant dense<0xFF800000> : vector<1x4xf32>
    %26 = vector.multi_reduction <maximumf>, %25, %cst_9 [2] : vector<1x4x1xf32> to vector<1x4xf32>
    %27 = vector.shape_cast %26 : vector<1x4xf32> to vector<1x4x1xf32>
    %cst_10 = arith.constant 0.000000e+00 : f32
    %28 = vector.broadcast %cst_10 : f32 to vector<1x4x1xf32>
    %29 = arith.maximumf %27, %28 : vector<1x4x1xf32>
    %30 = tpu.concatenate %18, %21, %24, %29 in 2 : vector<1x4x1xf32>, vector<1x4x1xf32>, vector<1x4x1xf32>, vector<1x4x1xf32> -> vector<1x4x4xf32>
    %c0_11 = arith.constant 0 : index
    %c0_12 = arith.constant 0 : index
    %c0_13 = arith.constant 0 : index
    %31 = vector.load %arg2[%c0_11, %c0_12, %c0_13] : memref<1x4x4xf32, #tpu.memory_space<vmem>>, vector<1x4x4xf32>
    tpu.vector_store %arg2[%c0_11, %c0_12, %c0_13], %30 {strides = array<i32>} : memref<1x4x4xf32, #tpu.memory_space<vmem>>, vector<1x4x4xf32>,
    return
  }
  func.func @transform_0(%arg0: i32) -> (i32, i32, i32) {
    %c0_i32 = arith.constant 0 : i32
    %c0_i32_0 = arith.constant 0 : i32
    %c0_i32_1 = arith.constant 0 : i32
    return %arg0, %c0_i32, %c0_i32_0 : i32, i32, i32
  }
  func.func @transform_1(%arg0: i32) -> (i32, i32, i32) {
    %c0_i32 = arith.constant 0 : i32
    %c0_i32_0 = arith.constant 0 : i32
    %c0_i32_1 = arith.constant 0 : i32
    return %arg0, %c0_i32, %c0_i32_0 : i32, i32, i32
  }
}

</mosaic_0001>

<bundles_post_ra>
// kernel: fixed_pooling.1
= control target key start
LH: loop header
LB: loop body
LE: loop exit
PB: predicated region body
PF: predicated region fallthrough
CT: control target
= control target key end

     0   :  { %6 = vsyncpa [#allocation3], 0  ;;  %s462_s0 = inlined_call_operand.vmem [shape: f32[2,13,10], index: 0, kind: input, shape index: {}]   ;;  %s463_s1 = inlined_call_operand.hbm [shape: f32[2,4,4], index: 1, kind: output, shape index: {}]  }
   0x1   :  { %8 = vsyncpa [#allocation3 + $0x1], 0  ;;  %s377_s6 = smov 0   ;;  %s379_s7 = smov 0  }
   0x2   :  { %s381_s8 = smov 0   ;;  %s383_s9 = smov 0  }
   0x3 LB: > { %s398_s10 = sadd.s32 4294967295, %s364_s9   ;;  %s250_s11 = sadd.s32 4294967294, %s364_s9   ;;  %s364_s9 = sphi %s383_s9, %s469_s9   ;;  %s360_s8 = sphi %s381_s8, %s468_s8   ;;  %s356_s7 = sphi %s379_s7, %s467_s7   ;;  %s352_s6 = sphi %s377_s6, %s466_s6  }
   0x4   : > { %s402_s12 = sadd.s32 1, %s364_s9   ;;  %s47_s13 = sadd.s32 1, %s360_s8 }
   0x5   : > { %s44_s14 = ssub.s32 %s364_s9, %s402_s12  ;;  %p57_p0 = scmp.ne.s32.totalorder %s360_s8, %s356_s7 }
   0x6   : > { %p45_p1 = scmp.eq.s32.totalorder %s44_s14, 0  ;;  %p58_p2 = scmp.eq.s32.totalorder %s398_s10, 1 }
   0x7   : > { %p63_p3 = scmp.ne.s32.totalorder %s356_s7, %s352_s6  ;;  %p64_p4 = scmp.eq.s32.totalorder %s250_s11, 1 }
   0x8   : > { %s413_s15 = scalar_select %p45_p1, %s360_s8, %s47_s13  }
   0x9   : > { %p415_p5 = por %p58_p2, %p57_p0  ;;  %p419_p6 = por %p64_p4, %p63_p3 }
   0xa   : > { %p253_p7 = scmp.ge.s32.totalorder %s364_s9, 1  ;;  %p90_p8 = scmp.lt.s32.totalorder %s364_s9, 3 }
   0xc   : > { %p91_p9 = pnand %p253_p7, %p90_p8 }
   0xd   : > { %p110_p10 = scmp.lt.s32.totalorder (!%p91_p9), %s398_s10, 1  ;;  %s366_s23 = smov (!%p91_p9), 122  }
   0xe   : > { %94 = sbr.rel (%p91_p9) target bundleno = 185 (0xb9), region = 24  ;;  %s107_s24 = sand.u32 (!%p91_p9), 1, %s356_s7  }
   0xf   : > { %s254_s25 = sshll.u32 (!%p91_p9), %s107_s24, 2  ;;  %s258_s26 = sshll.u32 (!%p91_p9), %s398_s10, 2 }
  0x10   : > { %s186_s29 = scalar_lea.hbm (!%p91_p9), %s463_s1, %s258_s26  ;;  %s109_s30 = scalar_lea.vmem (!%p91_p9), [#allocation2], %s254_s25 }
  0x11   : > { %s188_s2 = sshll.u32 (!%p91_p9), %s109_s30, 4  ;;  %s190_s3 = sshll.u32 (!%p91_p9), %s186_s29, 4  ;;  %s189_s2 = int_to_ptr.vmem [resolvable:$true] %s188_s2  ;;  %s191_s3 = int_to_ptr.hbm [resolvable:$true] %s190_s3 }
  0x12   : > { %s176_s4 = scalar_lea.sflag (!%p91_p9), [#allocation3], %s107_s24  ;;  %s316_s5 = sshra.s32 (!%p91_p9), %s191_s3, 4  ;;  %s317_s5 = int_to_ptr.hbm [resolvable:$true] %s316_s5 }
  0x13   : > { %s111_s18 = scalar_select %p110_p10, %s398_s10, 1  ;;  %vm117_vm0 = vcmask 76800   ;;  %vm125_vm1 = vcmask 80900   ;;  %vm144_vm2 = vcmask 1040384   ;;  %vm146_vm3 = vcmask 1041408  }
  0x14   : > { %vm148_vm4 = vcmask 1042432   ;;  %vm158_vm5 = vcmask 68656   ;;  %vm150_vm6 = vcmask 19456   ;;  %vm154_vm7 = vcmask 44056   ;;  %s318_s10 = scalar_lea.hbm %s317_s5, 4  ;;  %s322_s14 = scalar_lea.hbm %s463_s1, 8 }
  0x15   : > { %s261_s19 = sshll.u32 %s111_s18, 4  ;;  %vm167_vm8 = vcmask 7168   ;;  %vm169_vm9 = vcmask 15360   ;;  %vm171_vm10 = vcmask 23552   ;;  %vm173_vm11 = vcmask 27648   ;;  %p319_p11 = scmp.ne.s32.totalorder %s317_s5, %s318_s10 }
  0x16   : > { %s114_s22 = scalar_lea.vmem %s462_s0, %s261_s19  ;;  %p323_p0 = scmp.lt.s32.totalorder %s317_s5, %s463_s1 }
  0x17   : > { %v115_v0 = vld [vmem:[%s114_s22] sm:$0xff]  ;;  %v116_v1 = vld [vmem:[%s114_s22 + $0x8] sm:$0x1f]  ;;  %p320_p12 = pnand %p319_p11, %p415_p5  ;;  %p324_p1 = scmp.lt.s32.totalorder %s322_s14, %s318_s10 }
  0x18   : > { %v118_v2 = vsel %vm117_vm0, %v115_v0, -inf  ;;  %v126_v3 = vsel %vm125_vm1, %v115_v0, -inf  ;;  %v133_v4 = vsel %vm117_vm0, %v116_v1, -inf  ;;  %v140_v17 = vmax.f32 %v116_v1, 0.0 }
  0x19   : > { %v119_v5 = vrot.slane %v118_v2, 4  ;;  %v127_v6 = vrot.slane %v126_v3, 4  ;;  %v134_v7 = vrot.slane %v133_v4, 4  ;;  %p321_p13 = pneg %p320_p12  ;;  %p325_p2 = por %p324_p1, %p323_p0 }
  0x1a   : > { %v142_v24 = vrot.slane %v140_v17, 1 }
  0x1b   : > { %v120_v8 = vmax.f32 %v118_v2, %v119_v5  ;;  %v128_v9 = vmax.f32 %v126_v3, %v127_v6  ;;  %v135_v10 = vmax.f32 %v133_v4, %v134_v7  ;;  %p326_p3 = pnand %p325_p2, %p321_p13 }
  0x1d   : > { %v121_v11 = vrot.slane %v120_v8, 2  ;;  %v129_v12 = vrot.slane %v128_v9, 2  ;;  %v136_v13 = vrot.slane %v135_v10, 2 }
  0x1f   : > { %v122_v14 = vmax.f32 %v120_v8, %v121_v11  ;;  %v130_v15 = vmax.f32 %v128_v9, %v129_v12  ;;  %v137_v16 = vmax.f32 %v135_v10, %v136_v13 }
  0x21   : > { %v123_v18 = vrot.slane %v122_v14, 1  ;;  %v131_v19 = vrot.slane %v130_v15, 1  ;;  %v138_v20 = vrot.slane %v137_v16, 1 }
  0x23   : > { %v124_v21 = vmax.f32 %v122_v14, %v123_v18  ;;  %v132_v22 = vmax.f32 %v130_v15, %v131_v19  ;;  %v139_v23 = vmax.f32 %v137_v16, %v138_v20 }
  0x25   : > { %v145_v25 = vsel %vm144_vm2, %v124_v21, %v132_v22 }
  0x26   : > { %v147_v26 = vsel %vm146_vm3, %v145_v25, %v139_v23 }
  0x27   : > { %v149_v27 = vsel %vm148_vm4, %v147_v26, %v142_v24 }
  0x28   : > { %v159_v28 = vsel %vm158_vm5, %v149_v27, -inf  ;;  %v151_v29 = vsel %vm150_vm6, %v149_v27, -inf  ;;  %v155_v30 = vsel %vm154_vm7, %v149_v27, -inf  ;;  %v162_v31 = vmax.f32 %v149_v27, 0.0 }
  0x29   : > { %160 = vmax.xlane.f32.xlu1 %v159_v28  ;;  %152 = vmax.xlane.f32.xlu0 %v151_v29 }
  0x31   : > { %156 = vmax.xlane.f32.xlu0 %v155_v30 }
  0x42   : > { %164 = vrot.lane.b32.xlu1 %v162_v31, %s366_s23 }
  0x9c   : > { %v153_v32 = vpop.xlane.xlu0 %152  ;;  %v161_v33 = vpop.xlane.xlu1 %160 }
  0xa4   : > { %v157_v34 = vpop.xlane.xlu0 %156 }
  0xa5   : > { %v168_v35 = vsel %vm167_vm8, %v153_v32, %v157_v34 }
  0xa6   : > { %v170_v37 = vsel %vm169_vm9, %v168_v35, %v161_v33 }
  0xb4   : > { %v165_v36 = vpop.permute.xlu1 %164 }
  0xb5   : > { %v172_v38 = vsel %vm171_vm10, %v170_v37, %v165_v36 }
  0xb6   : > { %174 = vst.msk [vmem:[%s109_s30] sm:$0xf] %vm173_vm11, %v172_v38 }
  0xb7   : > { %329 = shalt.err (!%p326_p3)
}
  0xb8   : > { %262 = dma.vmem_to_hbm [thread:$0]  (%p415_p5), %s189_s2, 64, %s191_s3, %s176_s4  }
  0xb9 PF: > { %p268_p4 = scmp.ge.s32.totalorder %s364_s9, 2  ;;  %s202_s20 = sand.u32 1, %s352_s6  }
  0xba   : > { %s203_s21 = scalar_lea.sflag [#allocation3], %s202_s20 }
  0xbb   : > { %p265_p7 = pnand %p268_p4, %p419_p6 }
  0xbd   : > { %p266_p8 = pneg %p265_p7 }
  0xbf   : > { %347 = dma.done.wait (%p266_p8), %s203_s21, 64  }
  0xc0   : > { %349 = vsyncadd (%p266_p8), %s203_s21, 4294967232  ;;  %p11_p9 = scmp.ge.s32.totalorder %s402_s12, 4   ;;  %s466_s6 = smov %s356_s7 }
  0xc1   : > { %s467_s7 = smov %s360_s8  ;;  %s468_s8 = smov %s413_s15 }
  0xc2   : > { %s469_s9 = smov %s402_s12  ;;  %13 = sbr.rel (!%p11_p9) target bundleno = 3 (0x3), region = 59 }
  0xc7   :  { %209 = vsyncpa [#allocation3], 1 }
  0xc8   :  { %211 = vsyncpa [#allocation3 + $0x1], 1 }

</bundles_post_ra>
